<compile_context>
chip_gen: v5e
topology: v5e:2x2
jax: 0.10.0
libtpu: 0.0.40
codegen_flags: <defaults>
</compile_context>

<pallas_src>
import functools

import jax
import jax.numpy as jnp
from jax.experimental import pallas as pl
from jax.experimental.pallas import tpu as pltpu


# ---------------------------------------------------------------------------
# Pass 1: global average pool (f32 accumulation across HW tiles) + MLP.
# ---------------------------------------------------------------------------
def _pool_mlp_kernel(x_ref, w1_ref, w2_ref, scale_ref, acc_ref, *,
                     inv_hw, hw, hw_tile, mask_last):
    t = pl.program_id(1)

    @pl.when(t == 0)
    def _init():
        acc_ref[...] = jnp.zeros_like(acc_ref)

    x_tile = x_ref[...]                      # (C, HW_TILE), native dtype
    if mask_last:                            # trace-time: only when HW % HW_TILE != 0
        lane = jax.lax.broadcasted_iota(jnp.int32, x_tile.shape, 1)
        valid = (t * hw_tile + lane) < hw
        x_tile = jnp.where(valid, x_tile, jnp.zeros_like(x_tile))

    # f32 accumulation directly from the native-dtype tile (no persistent f32 temp).
    acc_ref[...] += jnp.sum(x_tile, axis=-1, keepdims=True, dtype=jnp.float32)

    @pl.when(t == pl.num_programs(1) - 1)
    def _finalize():
        pooled = acc_ref[...] * inv_hw                                   # (C, 1) f32
        # conv1 (1x1, C -> C//r, no bias) + ReLU
        y1 = jnp.dot(w1_ref[...].astype(jnp.float32), pooled,
                     preferred_element_type=jnp.float32)                 # (C//r, 1)
        y1 = jnp.maximum(y1, 0.0)
        # conv2 (1x1, C//r -> C, no bias) + Sigmoid
        y2 = jnp.dot(w2_ref[...].astype(jnp.float32), y1,
                     preferred_element_type=jnp.float32)                 # (C, 1)
        scale_ref[...] = jax.nn.sigmoid(y2)


# ---------------------------------------------------------------------------
# Pass 2: out = x * scale, streamed over lane-dense HW tiles, native dtype.
# ---------------------------------------------------------------------------
def _scale_kernel(scale_ref, x_ref, o_ref):
    s = scale_ref[...].astype(o_ref.dtype)   # only the (C, 1) vector is cast
    o_ref[...] = x_ref[...] * s              # full-tile work stays in input dtype


def _pick_hw_tile(hw):
    """Lane-dense spatial tile: whole plane when small, else a 128-multiple."""
    if hw <= 2048:
        return hw                            # block == full dim is always legal
    for t in (2048, 1024, 512, 256, 128):
        if hw % t == 0:
            return t
    return 512                               # non-dividing fallback; pass 1 masks


@functools.partial(jax.jit, donate_argnums=(0,))
def ca_layer(x, w1, w2):
    """Channel attention.  x: (B, C, H, W) NCHW; w1: (C//r, C); w2: (C, C//r)."""
    B, C, H, W = x.shape
    Cr = w1.shape[0]
    HW = H * W
    hw_tile = _pick_hw_tile(HW)
    n_hw = pl.cdiv(HW, hw_tile)
    mask_last = (HW % hw_tile) != 0

    x_flat = x.reshape(B, C, HW)

    # Batch dim squeezed out of the kernel refs -> plain (C, HW_TILE) tiles.
    x_spec = pl.BlockSpec((pl.Squeezed(), C, hw_tile), lambda b, t: (b, 0, t))
    scale_spec = pl.BlockSpec((pl.Squeezed(), C, 1), lambda b, t: (b, 0, 0))

    # ---- pass 1: pooled mean + tiny MLP -> per-(batch, channel) scale ------
    scale = pl.pallas_call(
        functools.partial(_pool_mlp_kernel, inv_hw=1.0 / HW, hw=HW,
                          hw_tile=hw_tile, mask_last=mask_last),
        out_shape=jax.ShapeDtypeStruct((B, C, 1), jnp.float32),
        grid_spec=pltpu.PrefetchScalarGridSpec(
            num_scalar_prefetch=0,
            grid=(B, n_hw),                       # reduction axis last
            in_specs=[
                x_spec,
                pl.BlockSpec((Cr, C), lambda b, t: (0, 0)),
                pl.BlockSpec((C, Cr), lambda b, t: (0, 0)),
            ],
            out_specs=scale_spec,                 # resident across the HW axis
            scratch_shapes=[pltpu.VMEM((C, 1), jnp.float32)],
        ),
        compiler_params=pltpu.CompilerParams(
            dimension_semantics=("parallel", "arbitrary")),
    )(x_flat, w1, w2)

    # ---- pass 2: out = x * scale, written in-place into x's buffer ---------
    # (Out-of-bounds lanes of a partial last tile are clipped by Pallas on
    #  writeback, so no masking is needed here.)
    out_flat = pl.pallas_call(
        _scale_kernel,
        out_shape=jax.ShapeDtypeStruct((B, C, HW), x.dtype),
        grid_spec=pltpu.PrefetchScalarGridSpec(
            num_scalar_prefetch=0,
            grid=(B, n_hw),
            in_specs=[scale_spec, x_spec],
            out_specs=x_spec,
        ),
        compiler_params=pltpu.CompilerParams(
            dimension_semantics=("parallel", "parallel")),
        input_output_aliases={1: 0},              # alias x_flat -> output
    )(scale, x_flat)

    return out_flat.reshape(B, C, H, W)


def ca_layer_ref(x, w1, w2):
    """Pure-JAX reference matching the PyTorch forward."""
    pooled = jnp.mean(x, axis=(2, 3), keepdims=True)                  # (B,C,1,1)
    y1 = jnp.einsum("oc,bcij->boij", w1, pooled)                      # (B,C//r,1,1)
    y1 = jnp.maximum(y1, 0.0)
    y2 = jnp.einsum("co,boij->bcij", w2, y1)                          # (B,C,1,1)
    y2 = jax.nn.sigmoid(y2)
    return x * y2


if __name__ == "__main__":
    key = jax.random.PRNGKey(0)
    k_x, k_w1, k_w2 = jax.random.split(key, 3)

    B, C, H, W = 2, 32, 8, 8
    reduction = 8
    Cr = C // reduction

    x = jax.random.normal(k_x, (B, C, H, W), dtype=jnp.float32)
    # Deterministic synthetic weights for the two bias-free 1x1 convs.
    w1 = jax.random.normal(k_w1, (Cr, C), dtype=jnp.float32) * (1.0 / jnp.sqrt(C))
    w2 = jax.random.normal(k_w2, (C, Cr), dtype=jnp.float32) * (1.0 / jnp.sqrt(Cr))

    # Reference first: x's buffer is donated to the kernel call below.
    ref = ca_layer_ref(x, w1, w2)

    out = ca_layer(x, w1, w2)
    out = jax.block_until_ready(out)

    assert out.shape == ref.shape and out.dtype == ref.dtype
    assert jnp.allclose(out, ref, atol=1e-5, rtol=1e-5), "mismatch vs reference"

    print("KERNEL_OK")
</pallas_src>

<mosaic_0001>
module attributes {stable_mosaic.version = 11 : i64} {
  func.func @_scale_kernel(%arg0: i32, %arg1: i32, %arg2: memref<1x32x1xf32, #tpu.memory_space<vmem>>, %arg3: memref<1x32x64xf32, #tpu.memory_space<vmem>>, %arg4: memref<1x32x64xf32, #tpu.memory_space<vmem>>) attributes {dimension_semantics = [#tpu.dimension_semantics<parallel>, #tpu.dimension_semantics<parallel>], iteration_bounds = array<i64: 2, 1>, scalar_prefetch = 0 : i64, scratch_operands = 0 : i64, tpu.core_type = #tpu.core_type<tc>, window_params = [{transform_indices = @transform_0, window_bounds = array<i64: 1, 32, 1>}, {transform_indices = @transform_1, window_bounds = array<i64: 1, 32, 64>}, {transform_indices = @transform_2, window_bounds = array<i64: 1, 32, 64>}]} {
    %c0 = arith.constant 0 : index
    %c0_0 = arith.constant 0 : index
    %c0_1 = arith.constant 0 : index
    %0 = vector.load %arg2[%c0, %c0_0, %c0_1] : memref<1x32x1xf32, #tpu.memory_space<vmem>>, vector<1x32x1xf32>
    %1 = vector.shape_cast %0 : vector<1x32x1xf32> to vector<32x1xf32>
    %c0_2 = arith.constant 0 : index
    %c0_3 = arith.constant 0 : index
    %c0_4 = arith.constant 0 : index
    %2 = vector.load %arg3[%c0_2, %c0_3, %c0_4] : memref<1x32x64xf32, #tpu.memory_space<vmem>>, vector<1x32x64xf32>
    %3 = vector.shape_cast %2 : vector<1x32x64xf32> to vector<32x64xf32>
    %4 = vector.broadcast %1 : vector<32x1xf32> to vector<32x64xf32>
    %5 = arith.mulf %3, %4 : vector<32x64xf32>
    %c0_5 = arith.constant 0 : index
    %c0_6 = arith.constant 0 : index
    %c0_7 = arith.constant 0 : index
    %6 = vector.load %arg4[%c0_5, %c0_6, %c0_7] : memref<1x32x64xf32, #tpu.memory_space<vmem>>, vector<1x32x64xf32>
    %7 = vector.shape_cast %6 : vector<1x32x64xf32> to vector<32x64xf32>
    %8 = vector.shape_cast %5 : vector<32x64xf32> to vector<1x32x64xf32>
    tpu.vector_store %arg4[%c0_5, %c0_6, %c0_7], %8 {strides = array<i32>} : memref<1x32x64xf32, #tpu.memory_space<vmem>>, vector<1x32x64xf32>,
    return
  }
  func.func @transform_0(%arg0: i32, %arg1: i32) -> (i32, i32, i32) {
    %c0_i32 = arith.constant 0 : i32
    %c0_i32_0 = arith.constant 0 : i32
    %c0_i32_1 = arith.constant 0 : i32
    return %arg0, %c0_i32, %c0_i32_0 : i32, i32, i32
  }
  func.func @transform_1(%arg0: i32, %arg1: i32) -> (i32, i32, i32) {
    %c0_i32 = arith.constant 0 : i32
    %c0_i32_0 = arith.constant 0 : i32
    return %arg0, %c0_i32, %arg1 : i32, i32, i32
  }
  func.func @transform_2(%arg0: i32, %arg1: i32) -> (i32, i32, i32) {
    %c0_i32 = arith.constant 0 : i32
    %c0_i32_0 = arith.constant 0 : i32
    return %arg0, %c0_i32, %arg1 : i32, i32, i32
  }
}

module attributes {stable_mosaic.version = 11 : i64} {
  func.func @_pool_mlp_kernel(%arg0: i32, %arg1: i32, %arg2: memref<1x32x64xf32, #tpu.memory_space<vmem>>, %arg3: memref<4x32xf32, #tpu.memory_space<vmem>>, %arg4: memref<32x4xf32, #tpu.memory_space<vmem>>, %arg5: memref<1x32x1xf32, #tpu.memory_space<vmem>>, %arg6: memref<32x1xf32, #tpu.memory_space<vmem>>) attributes {dimension_semantics = [#tpu.dimension_semantics<parallel>, #tpu.dimension_semantics<arbitrary>], iteration_bounds = array<i64: 2, 1>, scalar_prefetch = 0 : i64, scratch_operands = 1 : i64, tpu.core_type = #tpu.core_type<tc>, window_params = [{transform_indices = @transform_0, window_bounds = array<i64: 1, 32, 64>}, {pipeline_mode = #tpu.pipeline_mode<synchronous>, transform_indices = @transform_1, window_bounds = array<i64: 4, 32>}, {pipeline_mode = #tpu.pipeline_mode<synchronous>, transform_indices = @transform_2, window_bounds = array<i64: 32, 4>}, {transform_indices = @transform_3, window_bounds = array<i64: 1, 32, 1>}]} {
    %c0_i32 = arith.constant 0 : i32
    %0 = arith.cmpi eq, %arg1, %c0_i32 : i32
    %1 = arith.extui %0 : i1 to i32
    %c0_i32_0 = arith.constant 0 : i32
    %2 = arith.cmpi ne, %1, %c0_i32_0 : i32
    scf.if %2 {
      %cst_9 = arith.constant 0.000000e+00 : f32
      %13 = vector.broadcast %cst_9 : f32 to vector<32x1xf32>
      %c0_10 = arith.constant 0 : index
      %c0_11 = arith.constant 0 : index
      %14 = vector.load %arg6[%c0_10, %c0_11] : memref<32x1xf32, #tpu.memory_space<vmem>>, vector<32x1xf32>
      tpu.vector_store %arg6[%c0_10, %c0_11], %13 {strides = array<i32>} : memref<32x1xf32, #tpu.memory_space<vmem>>, vector<32x1xf32>,
    } else {
    }
    %c0 = arith.constant 0 : index
    %c0_1 = arith.constant 0 : index
    %c0_2 = arith.constant 0 : index
    %3 = vector.load %arg2[%c0, %c0_1, %c0_2] : memref<1x32x64xf32, #tpu.memory_space<vmem>>, vector<1x32x64xf32>
    %4 = vector.shape_cast %3 : vector<1x32x64xf32> to vector<32x64xf32>
    %c0_3 = arith.constant 0 : index
    %c0_4 = arith.constant 0 : index
    %5 = vector.load %arg6[%c0_3, %c0_4] : memref<32x1xf32, #tpu.memory_space<vmem>>, vector<32x1xf32>
    %cst = arith.constant dense<0.000000e+00> : vector<32xf32>
    %6 = vector.multi_reduction <add>, %4, %cst [1] : vector<32x64xf32> to vector<32xf32>
    %7 = vector.shape_cast %6 : vector<32xf32> to vector<32x1xf32>
    %8 = arith.addf %5, %7 : vector<32x1xf32>
    %c0_5 = arith.constant 0 : index
    %c0_6 = arith.constant 0 : index
    %9 = vector.load %arg6[%c0_5, %c0_6] : memref<32x1xf32, #tpu.memory_space<vmem>>, vector<32x1xf32>
    tpu.vector_store %arg6[%c0_5, %c0_6], %8 {strides = array<i32>} : memref<32x1xf32, #tpu.memory_space<vmem>>, vector<32x1xf32>,
    %c0_i32_7 = arith.constant 0 : i32
    %10 = arith.cmpi eq, %arg1, %c0_i32_7 : i32
    %11 = arith.extui %10 : i1 to i32
    %c0_i32_8 = arith.constant 0 : i32
    %12 = arith.cmpi ne, %11, %c0_i32_8 : i32
    scf.if %12 {
      %c0_9 = arith.constant 0 : index
      %c0_10 = arith.constant 0 : index
      %13 = vector.load %arg6[%c0_9, %c0_10] : memref<32x1xf32, #tpu.memory_space<vmem>>, vector<32x1xf32>
      %cst_11 = arith.constant 1.562500e-02 : f32
      %14 = vector.broadcast %cst_11 : f32 to vector<32x1xf32>
      %15 = arith.mulf %13, %14 : vector<32x1xf32>
      %c0_12 = arith.constant 0 : index
      %c0_13 = arith.constant 0 : index
      %16 = vector.load %arg3[%c0_12, %c0_13] : memref<4x32xf32, #tpu.memory_space<vmem>>, vector<4x32xf32>
      %cst_14 = arith.constant dense<0.000000e+00> : vector<4x1xf32>
      %17 = tpu.matmul %16, %15, %cst_14 {dimension_numbers = #tpu.dot_dimension_numbers<[1], [0], [0], [1], [0, 0, 1, 1], [], []>} : vector<4x32xf32>, vector<32x1xf32>, vector<4x1xf32> -> vector<4x1xf32>
      %cst_15 = arith.constant 0.000000e+00 : f32
      %18 = vector.broadcast %cst_15 : f32 to vector<4x1xf32>
      %19 = arith.maximumf %17, %18 : vector<4x1xf32>
      %c0_16 = arith.constant 0 : index
      %c0_17 = arith.constant 0 : index
      %20 = vector.load %arg4[%c0_16, %c0_17] : memref<32x4xf32, #tpu.memory_space<vmem>>, vector<32x4xf32>
      %cst_18 = arith.constant dense<0.000000e+00> : vector<32x1xf32>
      %21 = tpu.matmul %20, %19, %cst_18 {dimension_numbers = #tpu.dot_dimension_numbers<[1], [0], [0], [1], [0, 0, 1, 1], [], []>} : vector<32x4xf32>, vector<4x1xf32>, vector<32x1xf32> -> vector<32x1xf32>
      %22 = arith.negf %21 : vector<32x1xf32>
      %23 = math.exp %22 : vector<32x1xf32>
      %cst_19 = arith.constant 1.000000e+00 : f32
      %24 = vector.broadcast %cst_19 : f32 to vector<32x1xf32>
      %25 = arith.addf %24, %23 : vector<32x1xf32>
      %26 = arith.divf %24, %25 : vector<32x1xf32>
      %c0_20 = arith.constant 0 : index
      %c0_21 = arith.constant 0 : index
      %c0_22 = arith.constant 0 : index
      %27 = vector.load %arg5[%c0_20, %c0_21, %c0_22] : memref<1x32x1xf32, #tpu.memory_space<vmem>>, vector<1x32x1xf32>
      %28 = vector.shape_cast %27 : vector<1x32x1xf32> to vector<32x1xf32>
      %29 = vector.shape_cast %26 : vector<32x1xf32> to vector<1x32x1xf32>
      tpu.vector_store %arg5[%c0_20, %c0_21, %c0_22], %29 {strides = array<i32>} : memref<1x32x1xf32, #tpu.memory_space<vmem>>, vector<1x32x1xf32>,
    } else {
    }
    return
  }
  func.func @transform_0(%arg0: i32, %arg1: i32) -> (i32, i32, i32) {
    %c0_i32 = arith.constant 0 : i32
    %c0_i32_0 = arith.constant 0 : i32
    return %arg0, %c0_i32, %arg1 : i32, i32, i32
  }
  func.func @transform_1(%arg0: i32, %arg1: i32) -> (i32, i32) {
    %c0_i32 = arith.constant 0 : i32
    %c0_i32_0 = arith.constant 0 : i32
    %c0_i32_1 = arith.constant 0 : i32
    return %c0_i32, %c0_i32_0 : i32, i32
  }
  func.func @transform_2(%arg0: i32, %arg1: i32) -> (i32, i32) {
    %c0_i32 = arith.constant 0 : i32
    %c0_i32_0 = arith.constant 0 : i32
    %c0_i32_1 = arith.constant 0 : i32
    return %c0_i32, %c0_i32_0 : i32, i32
  }
  func.func @transform_3(%arg0: i32, %arg1: i32) -> (i32, i32, i32) {
    %c0_i32 = arith.constant 0 : i32
    %c0_i32_0 = arith.constant 0 : i32
    %c0_i32_1 = arith.constant 0 : i32
    return %arg0, %c0_i32, %c0_i32_0 : i32, i32, i32
  }
}

</mosaic_0001>

<bundles_post_ra>
// kernel: ca_layer.3
= control target key start
LH: loop header
LB: loop body
LE: loop exit
PB: predicated region body
PF: predicated region fallthrough
CT: control target
= control target key end

     0   :  { %s410_s9 = smov 0   ;;  %s412_s10 = smov 0   ;;  %s446_s0 = inlined_call_operand.vmem [shape: f32[2,32,1], index: 0, kind: input, shape index: {}]   ;;  %s447_s1 = inlined_call_operand.vmem [shape: f32[2,32,64], index: 1, kind: input, shape index: {}, may-alias: {1,2}]   ;;  %s448_s2 = inlined_call_operand.vmem [shape: f32[2,32,64], index: 2, kind: output, shape index: {}, may-alias: {1,2}]  }
   0x1   :  { %s414_s11 = smov 0  }
   0x2 LB: > { %s24_s12 = sadd.s32 1, %s388_s10  ;;  %p331_p0 = scmp.ge.s32.totalorder %s392_s11, 1  ;;  %s392_s11 = sphi %s414_s11, %s12_s11   ;;  %s388_s10 = sphi %s412_s10, %s450_s10   ;;  %s384_s9 = sphi %s410_s9, %s449_s9  }
   0x3   : > { %p26_p1 = scmp.ge.s32.totalorder %s24_s12, 2  ;;  %p141_p2 = scmp.lt.s32.totalorder %s392_s11, 3 }
   0x5   : > { %s452_s12 = smov (%p26_p1, %s24_s12), 0  ;;  %p142_p3 = pnand %p331_p0, %p141_p2 }
   0x6   : > { %p174_p4 = scmp.lt.s32.totalorder (!%p142_p3), %s384_s9, 1 }
   0x7   : > { %145 = sbr.rel (%p142_p3) target bundleno = 143 (0x8f), region = 28 }
   0xc   : > { %v394_v0 = vmov 0   ;;  %s454_s9 = smov (!%p174_p4, %s384_s9), 1  ;;  %vm227_vm0 = vcmask 523264  }
   0xd   : > { %369 = vset.pattern.permute.xlu1 %v394_v0  ;;  %368 = vset.pattern.permute.xlu0 %v394_v0  ;;  %s340_s13 = sshll.u32 %s454_s9, 5 }
   0xe   : > { %s178_s16 = scalar_lea.vmem %s446_s0, %s340_s13  ;;  %s186_s19 = scalar_lea.vmem %s447_s1, %s340_s13 }
   0xf   : > { %v197_v1 = vld [vmem:[%s178_s16 + $0x10] sm:$0xff]  ;;  %v195_v2 = vld [vmem:[%s178_s16] sm:$0xff]  ;;  %v198_v3 = vld [vmem:[%s178_s16 + $0x18] sm:$0xff]  ;;  %s194_s22 = scalar_lea.vmem %s448_s2, %s340_s13 }
  0x10   : > { %215 = vperm.xlu1 %369, %v197_v1   ;;  %205 = vperm.xlu0 %368, %v195_v2   ;;  %v196_v4 = vld [vmem:[%s178_s16 + $0x8] sm:$0xff]  ;;  %v201_v5 = vld [vmem:[%s186_s19 + $0x10] sm:$0xff]  ;;  %v199_v6 = vld [vmem:[%s186_s19] sm:$0xff] }
  0x11   : > { %v202_v9 = vld [vmem:[%s186_s19 + $0x18] sm:$0xff]  ;;  %v200_v10 = vld [vmem:[%s186_s19 + $0x8] sm:$0xff] }
  0x18   : > { %220 = vperm.xlu1 %369, %v198_v3   ;;  %210 = vperm.xlu0 %368, %v196_v4  }
  0x82   : > { %v216_v7 = vpop.permute.xlu1 %215  ;;  %v206_v8 = vpop.permute.xlu0 %205 }
  0x83   : > { %v225_v11 = vmul.f32 %v216_v7, %v201_v5  ;;  %v223_v12 = vmul.f32 %v206_v8, %v199_v6 }
  0x85   : > { %228 = vst.msk [vmem:[%s194_s22] sm:$0xff] %vm227_vm0, %v223_v12 }
  0x86   : > { %230 = vst.msk [vmem:[%s194_s22 + $0x10] sm:$0xff] %vm227_vm0, %v225_v11 }
  0x8a   : > { %v221_v13 = vpop.permute.xlu1 %220  ;;  %v211_v14 = vpop.permute.xlu0 %210 }
  0x8b   : > { %v226_v15 = vmul.f32 %v221_v13, %v202_v9  ;;  %v224_v16 = vmul.f32 %v211_v14, %v200_v10 }
  0x8d   : > { %231 = vst.msk [vmem:[%s194_s22 + $0x18] sm:$0xff] %vm227_vm0, %v226_v15 }
  0x8e   : > { %229 = vst.msk [vmem:[%s194_s22 + $0x8] sm:$0xff] %vm227_vm0, %v224_v16 }
  0x8f PF: > { %s12_s11 = sadd.s32 1, %s392_s11   ;;  %s449_s9 = smov %s388_s10 }
  0x90   : > { %p9_p5 = scmp.ge.s32.totalorder %s12_s11, 4   ;;  %s450_s10 = smov %s452_s12 }
  0x92   :  { %11 = sbr.rel (!%p9_p5) target bundleno = 2 (0x2), region = 61 }

// kernel: ca_layer.2
= control target key start
LH: loop header
LB: loop body
LE: loop exit
PB: predicated region body
PF: predicated region fallthrough
CT: control target
= control target key end

     0   :  { %s580_s12 = smov 0   ;;  %s582_s13 = smov 0   ;;  %s653_s0 = inlined_call_operand.vmem [shape: f32[2,32,64], index: 0, kind: input, shape index: {}]   ;;  %s654_s1 = inlined_call_operand.vmem [shape: f32[4,32], index: 1, kind: input, shape index: {}]   ;;  %s655_s2 = inlined_call_operand.vmem [shape: f32[32,4], index: 2, kind: input, shape index: {}]   ;;  %s656_s3 = inlined_call_operand.vmem [shape: f32[2,32,1], index: 3, kind: output, shape index: {}]  }
   0x1   :  { %s584_s14 = smov 0  }
   0x2 LB: > { %s25_s15 = sadd.s32 1, %s553_s13  ;;  %p473_p0 = scmp.ge.s32.totalorder %s557_s14, 1  ;;  %s557_s14 = sphi %s584_s14, %s13_s14   ;;  %s553_s13 = sphi %s582_s13, %s658_s13   ;;  %s549_s12 = sphi %s580_s12, %s657_s12  }
   0x3   : > { %p27_p1 = scmp.ge.s32.totalorder %s25_s15, 2  ;;  %p154_p2 = scmp.lt.s32.totalorder %s557_s14, 3 }
   0x5   : > { %s660_s15 = smov (%p27_p1, %s25_s15), 0  ;;  %p155_p3 = pnand %p473_p0, %p154_p2 }
   0x6   : > { %p181_p4 = scmp.lt.s32.totalorder (!%p155_p3), %s549_s12, 1 }
   0x7   : > { %158 = sbr.rel (%p155_p3) target bundleno = 456 (0x1c8), region = 32 }
   0xc   : > { %vm198_vm0 = vcmask 7168   ;;  %v559_v0 = vmov 0.0   ;;  %s662_s12 = smov (!%p181_p4, %s549_s12), 1  ;;  %vm211_vm1 = vcmask 523264   ;;  %v244_v29 = vld [vmem:[%s654_s1] sm:$0xf] }
   0xd   : > { %202 = vst.msk [vmem:[#allocation2 + $0x18] sm:$0xff] %vm198_vm0, %v559_v0  ;;  %s490_s16 = sshll.u32 %s662_s12, 5  ;;  %vm245_vm2 = vcmask 261120   ;;  %vm287_vm3 = vcmask 1043456   ;;  %v271_v32 = vld [vmem:[%s655_s2 + $0x8] sm:$0xff]  ;;  %vm274_vm4 = vcmask 31744  }
   0xe   : > { %199 = vst.msk [vmem:[#allocation2] sm:$0xff] %vm198_vm0, %v559_v0  ;;  %s188_s19 = scalar_lea.vmem %s653_s0, %s490_s16  ;;  %v273_v33 = vld [vmem:[%s655_s2 + $0x18] sm:$0xff]  ;;  %v270_v34 = vld [vmem:[%s655_s2] sm:$0xff]  ;;  %v272_v35 = vld [vmem:[%s655_s2 + $0x10] sm:$0xff]  ;;  %s634_s5 = scalar_lea.vmem %s656_s3, %s490_s16 }
   0xf   : > { %200 = vst.msk [vmem:[#allocation2 + $0x8] sm:$0xff] %vm198_vm0, %v559_v0  ;;  %v206_v1 = vld [vmem:[%s188_s19 + $0x18] sm:$0xff]  ;;  %v204_v2 = vld [vmem:[%s188_s19 + $0x8] sm:$0xff]  ;;  %v205_v5 = vld [vmem:[%s188_s19 + $0x10] sm:$0xff] }
  0x10   : > { %201 = vst.msk [vmem:[#allocation2 + $0x10] sm:$0xff] %vm198_vm0, %v559_v0  ;;  %v221_v3 = vsel %vm211_vm1, %v206_v1, 0.0  ;;  %v215_v4 = vsel %vm211_vm1, %v204_v2, 0.0  ;;  %v203_v6 = vld [vmem:[%s188_s19] sm:$0xff]  ;;  %v218_v7 = vsel %vm211_vm1, %v205_v5, 0.0 }
  0x11   : > { %222 = vadd.xlane.f32.xlu0 %v221_v3  ;;  %216 = vadd.xlane.f32.xlu1 %v215_v4  ;;  %v212_v8 = vsel %vm211_vm1, %v203_v6, 0.0 }
  0x14   : > { %v210_v9 = vld [vmem:[#allocation2 + $0x18] sm:$0xff] }
  0x15   : > { %v207_v16 = vld [vmem:[#allocation2] sm:$0xff] }
  0x16   : > { %v208_v10 = vld [vmem:[#allocation2 + $0x8] sm:$0xff] }
  0x17   : > { %v209_v15 = vld [vmem:[#allocation2 + $0x10] sm:$0xff] }
  0x19   : > { %219 = vadd.xlane.f32.xlu0 %v218_v7  ;;  %213 = vadd.xlane.f32.xlu1 %v212_v8 }
  0x84   : > { %v223_v11 = vpop.xlane.xlu0 %222  ;;  %v217_v12 = vpop.xlane.xlu1 %216 }
  0x85   : > { %v227_v13 = vadd.f32 %v223_v11, %v210_v9  ;;  %v225_v14 = vadd.f32 %v217_v12, %v208_v10 }
  0x87   : > { %232 = vst.msk [vmem:[#allocation2 + $0x18] sm:$0xff] %vm198_vm0, %v227_v13 }
  0x88   : > { %230 = vst.msk [vmem:[#allocation2 + $0x8] sm:$0xff] %vm198_vm0, %v225_v14 }
  0x8c   : > { %v220_v17 = vpop.xlane.xlu0 %219  ;;  %v214_v18 = vpop.xlane.xlu1 %213 }
  0x8d   : > { %v226_v19 = vadd.f32 %v220_v17, %v209_v15  ;;  %v224_v20 = vadd.f32 %v214_v18, %v207_v16 }
  0x8e   : > { %v239_v21 = vld [vmem:[#allocation2 + $0x18] sm:$0xff] }
  0x8f   : > { %231 = vst.msk [vmem:[#allocation2 + $0x10] sm:$0xff] %vm198_vm0, %v226_v19  ;;  %v243_v22 = vmul.f32 0.015625, %v239_v21  ;;  %v237_v24 = vld [vmem:[#allocation2 + $0x8] sm:$0xff] }
  0x90   : > { %229 = vst.msk [vmem:[#allocation2] sm:$0xff] %vm198_vm0, %v224_v20  ;;  %v241_v27 = vmul.f32 0.015625, %v237_v24 }
  0x91   : > { %261 = vmatpush.msra.mxu0 %v243_v22 }
  0x96   : > { %v238_v23 = vld [vmem:[#allocation2 + $0x10] sm:$0xff] }
  0x97   : > { %v242_v25 = vmul.f32 0.015625, %v238_v23  ;;  %v236_v26 = vld [vmem:[#allocation2] sm:$0xff] }
  0x98   : > { %v240_v28 = vmul.f32 0.015625, %v236_v26 }
  0x99   : > { %262 = vmatpush.msra.mxu0 %v242_v25 }
  0x9b   : > { %263 = vmatpush.msra.mxu0 %v241_v27 }
  0x9d   : > { %264 = vmatpush.msra.mxu0 %v240_v28 }
  0x9e   : > { %478 = vmatmul.msk.f32.vlgmr.msra.gmra.mxu0 %vm245_vm2, %v244_v29 }
 0x11b   : > { %v266_v30 = vpop.f32.mrf.mxu0 }
 0x11c   : > { %v269_v31 = vmax.f32 %v266_v30, 0.0 }
 0x11e   : > { %479 = vmatpush.msk.msra.mxu1 %vm287_vm3, %v269_v31  ;;  %492 = vmatpush.msk.msra.mxu2 %vm287_vm3, %v269_v31 }
 0x11f   : > { %493 = vmatpush.msk.msra.mxu3 %vm287_vm3, %v269_v31  ;;  %481 = vmatmul.msk.f32.vlgmr.msra.gmra.mxu2 %vm274_vm4, %v271_v32 }
 0x120   : > { %483 = vmatmul.msk.f32.vlgmr.msra.gmra.mxu3 %vm274_vm4, %v273_v33  ;;  %480 = vmatmul.msk.f32.vlgmr.msra.gmra.mxu1 %vm274_vm4, %v270_v34 }
 0x127   : > { %482 = vmatmul.msk.f32.gmra.mxu2 %vm274_vm4, %v272_v35 }
 0x19d   : > { %v308_v36 = vpop.f32.mrf.mxu1 }
 0x19e   : > { %v484_v37 = vmul.f32 -1.442695, %v308_v36 }
 0x1a0   : > { %519 = vpow2.f32 %v484_v37 }
 0x1a2   : > { %v311_v38 = vpop.f32.mrf.mxu2 }
 0x1a3   : > { %v485_v39 = vmul.f32 -1.442695, %v311_v38  ;;  %v317_v40 = vpop.f32.mrf.mxu3 }
 0x1a4   : > { %v487_v41 = vmul.f32 -1.442695, %v317_v40 }
 0x1a5   : > { %521 = vpow2.f32 %v485_v39 }
 0x1a6   : > { %v520_v42 = vpop.eup %519  ;;  %523 = vpow2.f32 %v487_v41 }
 0x1a7   : > { %v332_v43 = vadd.f32 1.0, %v520_v42 }
 0x1a9   : > { %525 = vrcp.f32 %v332_v43  ;;  %v347_v52 = vand.u32 2147483648, %v332_v43  ;;  %vm341_vm5 = vweird.f32 %v332_v43  ;;  %v345_v54 = vand.u32 2147483647, %v332_v43 }
 0x1aa   : > { %v314_v44 = vpop.f32.mrf.mxu2 }
 0x1ab   : > { %v522_v45 = vpop.eup %521  ;;  %v486_v46 = vmul.f32 -1.442695, %v314_v44  ;;  %v348_v60 = vor.u32 1.1754944e-38, %v347_v52  ;;  %vm346_vm8 = vcmp.eq.f32.partialorder %v345_v54, 8.507059e+37 }
 0x1ac   : > { %v524_v47 = vpop.eup %523  ;;  %v333_v48 = vadd.f32 1.0, %v522_v45 }
 0x1ad   : > { %v335_v49 = vadd.f32 1.0, %v524_v47  ;;  %527 = vpow2.f32 %v486_v46 }
 0x1ae   : > { %529 = vrcp.f32 %v333_v48  ;;  %v360_v2 = vand.u32 2147483647, %v333_v48  ;;  %v362_v3 = vand.u32 2147483648, %v333_v48  ;;  %vm356_vm12 = vweird.f32 %v333_v48 }
 0x1af   : > { %v526_v50 = vpop.eup %525  ;;  %531 = vrcp.f32 %v335_v49  ;;  %v392_v7 = vand.u32 2147483648, %v335_v49  ;;  %vm386_vm10 = vweird.f32 %v335_v49  ;;  %v390_v9 = vand.u32 2147483647, %v335_v49 }
 0x1b0   : > { %v337_v51 = vmul.f32 %v526_v50, %v332_v43  ;;  %vm342_vm6 = vweird.f32 %v526_v50  ;;  %v363_v12 = vor.u32 1.1754944e-38, %v362_v3  ;;  %vm361_vm14 = vcmp.eq.f32.partialorder %v360_v2, 8.507059e+37 }
 0x1b1   : > { %vm343_vm7 = vmor %vm341_vm5, %vm342_vm6  ;;  %v393_v15 = vor.u32 1.1754944e-38, %v392_v7  ;;  %vm391_vm1 = vcmp.eq.f32.partialorder %v390_v9, 8.507059e+37 }
 0x1b2   : > { %v338_v53 = vsub.f32 1.0, %v337_v51 }
 0x1b3   : > { %v528_v55 = vpop.eup %527 }
 0x1b4   : > { %v530_v56 = vpop.eup %529  ;;  %v339_v57 = vmul.f32 %v526_v50, %v338_v53  ;;  %v334_v58 = vadd.f32 1.0, %v528_v55 }
 0x1b5   : > { %v532_v59 = vpop.eup %531  ;;  %v352_v61 = vmul.f32 %v530_v56, %v333_v48  ;;  %vm357_vm9 = vweird.f32 %v530_v56 }
 0x1b6   : > { %v340_v62 = vadd.f32 %v526_v50, %v339_v57  ;;  %v382_v63 = vmul.f32 %v532_v59, %v335_v49  ;;  %533 = vrcp.f32 %v334_v58  ;;  %vm387_vm11 = vweird.f32 %v532_v59  ;;  %vm358_vm13 = vmor %vm356_vm12, %vm357_vm9 }
 0x1b7   : > { %v353_v0 = vsub.f32 1.0, %v352_v61  ;;  %vm388_vm15 = vmor %vm386_vm10, %vm387_vm11  ;;  %v377_v21 = vand.u32 2147483648, %v334_v58  ;;  %v375_v23 = vand.u32 2147483647, %v334_v58  ;;  %vm371_vm3 = vweird.f32 %v334_v58 }
 0x1b8   : > { %v344_v1 = vsel %vm343_vm7, %v526_v50, %v340_v62  ;;  %v383_v4 = vsub.f32 1.0, %v382_v63 }
 0x1b9   : > { %v349_v5 = vsel %vm346_vm8, %v348_v60, %v344_v1  ;;  %v354_v6 = vmul.f32 %v530_v56, %v353_v0  ;;  %v378_v25 = vor.u32 1.1754944e-38, %v377_v21  ;;  %vm376_vm5 = vcmp.eq.f32.partialorder %v375_v23, 8.507059e+37 }
 0x1ba   : > { %396 = vst.msk [vmem:[%s634_s5] sm:$0xff] %vm198_vm0, %v349_v5  ;;  %v384_v8 = vmul.f32 %v532_v59, %v383_v4 }
 0x1bb   : > { %v355_v10 = vadd.f32 %v530_v56, %v354_v6 }
 0x1bc   : > { %v534_v11 = vpop.eup %533  ;;  %v385_v13 = vadd.f32 %v532_v59, %v384_v8 }
 0x1bd   : > { %v359_v14 = vsel %vm358_vm13, %v530_v56, %v355_v10  ;;  %v367_v16 = vmul.f32 %v534_v11, %v334_v58  ;;  %vm372_vm2 = vweird.f32 %v534_v11 }
 0x1be   : > { %v364_v17 = vsel %vm361_vm14, %v363_v12, %v359_v14  ;;  %v389_v18 = vsel %vm388_vm15, %v532_v59, %v385_v13  ;;  %vm373_vm4 = vmor %vm371_vm3, %vm372_vm2 }
 0x1bf   : > { %397 = vst.msk [vmem:[%s634_s5 + $0x8] sm:$0xff] %vm198_vm0, %v364_v17  ;;  %v394_v19 = vsel %vm391_vm1, %v393_v15, %v389_v18  ;;  %v368_v20 = vsub.f32 1.0, %v367_v16 }
 0x1c0   : > { %399 = vst.msk [vmem:[%s634_s5 + $0x18] sm:$0xff] %vm198_vm0, %v394_v19 }
 0x1c1   : > { %v369_v22 = vmul.f32 %v534_v11, %v368_v20 }
 0x1c3   : > { %v370_v24 = vadd.f32 %v534_v11, %v369_v22 }
 0x1c5   : > { %v374_v26 = vsel %vm373_vm4, %v534_v11, %v370_v24 }
 0x1c6   : > { %v379_v27 = vsel %vm376_vm5, %v378_v25, %v374_v26 }
 0x1c7   : > { %398 = vst.msk [vmem:[%s634_s5 + $0x10] sm:$0xff] %vm198_vm0, %v379_v27 }
 0x1c8 PF: > { %s13_s14 = sadd.s32 1, %s557_s14   ;;  %s657_s12 = smov %s553_s13 }
 0x1c9   : > { %p10_p5 = scmp.ge.s32.totalorder %s13_s14, 4   ;;  %s658_s13 = smov %s660_s15 }
 0x1cb   :  { %12 = sbr.rel (!%p10_p5) target bundleno = 2 (0x2), region = 70 }

</bundles_post_ra>
